<compile_context>
chip_gen: v7x
topology: tpu7x:2x2x1
jax: 0.10.0
libtpu: 0.0.40
codegen_flags: <defaults>
</compile_context>

<pallas_src>
import jax
import jax.numpy as jnp
from jax.experimental import pallas as pl
from jax.experimental.pallas import tpu as pltpu


def _round_up(n, m):
    return ((n + m - 1) // m) * m


def policy_kernel(x_ref, w1_ref, b1_ref, w2_ref, b2_ref, o_ref):
    # --- fc1 + ReLU: bf16 operands, f32 accumulation on the MXU ---
    x = x_ref[...]                                                      # [TB, S] bf16
    h = jnp.dot(x, w1_ref[...], preferred_element_type=jnp.float32)    # [TB, Hp] f32
    h = jnp.maximum(h + b1_ref[...], 0.0)                              # bias bcast [1, Hp]

    # --- fc2: cast activations back to bf16 for the MXU, accumulate f32 ---
    logits = jnp.dot(h.astype(jnp.bfloat16), w2_ref[...],
                     preferred_element_type=jnp.float32)               # [TB, Ap] f32
    logits = logits + b2_ref[...]   # padded action lanes carry -1e9 -> exp == 0

    # --- numerically stable softmax along lanes; reciprocal on the EUP slot ---
    m = jnp.max(logits, axis=-1, keepdims=True)
    e = jnp.exp(logits - m)
    denom = jnp.sum(e, axis=-1, keepdims=True)
    o_ref[...] = (e * pl.reciprocal(denom, approx=True)).astype(o_ref.dtype)


def prepare_params(w1, b1, w2, b2, *, lane=128, neg_inf=-1e9):
    """One-time layout prep: torch [out, in] f32 -> padded [in, out] bf16 (+f32 biases)."""
    w1 = jnp.asarray(w1, jnp.float32)
    b1 = jnp.asarray(b1, jnp.float32)
    w2 = jnp.asarray(w2, jnp.float32)
    b2 = jnp.asarray(b2, jnp.float32)
    hidden, state = w1.shape
    action = w2.shape[0]
    hp = _round_up(hidden, lane)
    ap = _round_up(action, lane)

    w1_p = jnp.zeros((state, hp), jnp.bfloat16).at[:, :hidden].set(w1.T.astype(jnp.bfloat16))
    b1_p = jnp.zeros((1, hp), jnp.float32).at[0, :hidden].set(b1)
    w2_p = jnp.zeros((hp, ap), jnp.bfloat16).at[:hidden, :action].set(w2.T.astype(jnp.bfloat16))
    # Padded action lanes get a large negative bias so they vanish in the softmax.
    b2_p = jnp.full((1, ap), neg_inf, jnp.float32).at[0, :action].set(b2)
    return w1_p, b1_p, w2_p, b2_p


def make_policy_forward(w1, b1, w2, b2, *, block_b=128):
    """Returns a jitted forward(x) -> probs [B, action], closing over pre-laid-out params."""
    w1_p, b1_p, w2_p, b2_p = prepare_params(w1, b1, w2, b2)
    state = w1_p.shape[0]
    hp = w1_p.shape[1]
    ap = w2_p.shape[1]
    action = w2.shape[0]

    def fwd(x):
        batch = x.shape[0]
        tb = min(block_b, _round_up(max(batch, 8), 8))   # batch tile, multiple of 8
        bp = _round_up(batch, tb)
        xb = jnp.asarray(x, jnp.bfloat16)
        if bp != batch:
            xb = jnp.pad(xb, ((0, bp - batch), (0, 0)))

        out = pl.pallas_call(
            policy_kernel,
            out_shape=jax.ShapeDtypeStruct((bp, ap), jnp.float32),
            grid_spec=pltpu.PrefetchScalarGridSpec(
                num_scalar_prefetch=0,
                grid=(bp // tb,),
                in_specs=[
                    pl.BlockSpec((tb, state), lambda i: (i, 0)),   # x: batch-tiled
                    pl.BlockSpec((state, hp), lambda i: (0, 0)),   # w1: VMEM-resident
                    pl.BlockSpec((1, hp), lambda i: (0, 0)),       # b1: VMEM-resident
                    pl.BlockSpec((hp, ap), lambda i: (0, 0)),      # w2: VMEM-resident
                    pl.BlockSpec((1, ap), lambda i: (0, 0)),       # b2: VMEM-resident
                ],
                out_specs=pl.BlockSpec((tb, ap), lambda i: (i, 0)),  # lane-dense (Ap=128)
            ),
            compiler_params=pltpu.CompilerParams(
                dimension_semantics=("parallel",),      # shard batch across TCs on v7x
                vmem_limit_bytes=64 * 1024 * 1024,
            ),
        )(xb, w1_p, b1_p, w2_p, b2_p)
        return out[:batch, :action]

    return jax.jit(fwd)


if __name__ == "__main__":
    # Small shapes consistent with the module (grid-world policy net), batched rollout style.
    batch, state_size, hidden_size, action_size = 256, 8, 16, 4

    key = jax.random.PRNGKey(0)
    kx, kw1, kb1, kw2, kb2 = jax.random.split(key, 5)

    x = jax.random.normal(kx, (batch, state_size), dtype=jnp.float32)
    # torch.nn.Linear layout: W [out, in], b [out]
    w1 = jax.random.normal(kw1, (hidden_size, state_size), dtype=jnp.float32) * 0.1
    b1 = jax.random.normal(kb1, (hidden_size,), dtype=jnp.float32) * 0.1
    w2 = jax.random.normal(kw2, (action_size, hidden_size), dtype=jnp.float32) * 0.1
    b2 = jax.random.normal(kb2, (action_size,), dtype=jnp.float32) * 0.1

    forward = make_policy_forward(w1, b1, w2, b2, block_b=128)
    probs = forward(x)
    jax.block_until_ready(probs)

    # Pure-JAX reference with matching bf16 operand precision (f32 accumulation).
    xb = x.astype(jnp.bfloat16)
    w1b = w1.T.astype(jnp.bfloat16)
    w2b = w2.T.astype(jnp.bfloat16)
    h_ref = jnp.maximum(jnp.dot(xb, w1b, preferred_element_type=jnp.float32) + b1, 0.0)
    logits_ref = jnp.dot(h_ref.astype(jnp.bfloat16), w2b,
                         preferred_element_type=jnp.float32) + b2
    ref = jax.nn.softmax(logits_ref, axis=-1)

    assert probs.shape == (batch, action_size)
    assert jnp.allclose(probs, ref, atol=5e-3, rtol=5e-3), "mismatch vs reference"
    assert jnp.allclose(jnp.sum(probs, axis=-1), 1.0, atol=5e-3), "rows must sum to 1"

    print("KERNEL_OK")
</pallas_src>

<mosaic_0001>
module attributes {stable_mosaic.version = 11 : i64} {
  func.func @policy_kernel(%arg0: i32, %arg1: memref<128x8xbf16, #tpu.memory_space<vmem>>, %arg2: memref<8x128xbf16, #tpu.memory_space<vmem>>, %arg3: memref<1x128xf32, #tpu.memory_space<vmem>>, %arg4: memref<128x128xbf16, #tpu.memory_space<vmem>>, %arg5: memref<1x128xf32, #tpu.memory_space<vmem>>, %arg6: memref<128x128xf32, #tpu.memory_space<vmem>>) attributes {dimension_semantics = [#tpu.dimension_semantics<parallel>], iteration_bounds = array<i64: 2>, scalar_prefetch = 0 : i64, scratch_operands = 0 : i64, tpu.core_type = #tpu.core_type<tc>, window_params = [{transform_indices = @transform_0, window_bounds = array<i64: 128, 8>}, {pipeline_mode = #tpu.pipeline_mode<synchronous>, transform_indices = @transform_1, window_bounds = array<i64: 8, 128>}, {pipeline_mode = #tpu.pipeline_mode<synchronous>, transform_indices = @transform_2, window_bounds = array<i64: 1, 128>}, {pipeline_mode = #tpu.pipeline_mode<synchronous>, transform_indices = @transform_3, window_bounds = array<i64: 128, 128>}, {pipeline_mode = #tpu.pipeline_mode<synchronous>, transform_indices = @transform_4, window_bounds = array<i64: 1, 128>}, {transform_indices = @transform_5, window_bounds = array<i64: 128, 128>}]} {
    %c0 = arith.constant 0 : index
    %c0_0 = arith.constant 0 : index
    %0 = vector.load %arg1[%c0, %c0_0] : memref<128x8xbf16, #tpu.memory_space<vmem>>, vector<128x8xbf16>
    %c0_1 = arith.constant 0 : index
    %c0_2 = arith.constant 0 : index
    %1 = vector.load %arg2[%c0_1, %c0_2] : memref<8x128xbf16, #tpu.memory_space<vmem>>, vector<8x128xbf16>
    %cst = arith.constant dense<0.000000e+00> : vector<128x128xf32>
    %2 = tpu.matmul %0, %1, %cst {dimension_numbers = #tpu.dot_dimension_numbers<[1], [0], [0], [1], [0, 0, 1, 1], [], []>} : vector<128x8xbf16>, vector<8x128xbf16>, vector<128x128xf32> -> vector<128x128xf32>
    %c0_3 = arith.constant 0 : index
    %c0_4 = arith.constant 0 : index
    %3 = vector.load %arg3[%c0_3, %c0_4] : memref<1x128xf32, #tpu.memory_space<vmem>>, vector<1x128xf32>
    %4 = vector.broadcast %3 : vector<1x128xf32> to vector<128x128xf32>
    %5 = arith.addf %2, %4 : vector<128x128xf32>
    %cst_5 = arith.constant 0.000000e+00 : f32
    %6 = vector.broadcast %cst_5 : f32 to vector<128x128xf32>
    %7 = arith.maximumf %5, %6 : vector<128x128xf32>
    %8 = arith.truncf %7 : vector<128x128xf32> to vector<128x128xbf16>
    %c0_6 = arith.constant 0 : index
    %c0_7 = arith.constant 0 : index
    %9 = vector.load %arg4[%c0_6, %c0_7] : memref<128x128xbf16, #tpu.memory_space<vmem>>, vector<128x128xbf16>
    %cst_8 = arith.constant dense<0.000000e+00> : vector<128x128xf32>
    %10 = tpu.matmul %8, %9, %cst_8 {dimension_numbers = #tpu.dot_dimension_numbers<[1], [0], [0], [1], [0, 0, 1, 1], [], []>} : vector<128x128xbf16>, vector<128x128xbf16>, vector<128x128xf32> -> vector<128x128xf32>
    %c0_9 = arith.constant 0 : index
    %c0_10 = arith.constant 0 : index
    %11 = vector.load %arg5[%c0_9, %c0_10] : memref<1x128xf32, #tpu.memory_space<vmem>>, vector<1x128xf32>
    %12 = vector.broadcast %11 : vector<1x128xf32> to vector<128x128xf32>
    %13 = arith.addf %10, %12 : vector<128x128xf32>
    %cst_11 = arith.constant dense<0xFF800000> : vector<128xf32>
    %14 = vector.multi_reduction <maximumf>, %13, %cst_11 [1] : vector<128x128xf32> to vector<128xf32>
    %15 = vector.shape_cast %14 : vector<128xf32> to vector<128x1xf32>
    %16 = vector.broadcast %15 : vector<128x1xf32> to vector<128x128xf32>
    %17 = arith.subf %13, %16 : vector<128x128xf32>
    %18 = math.exp %17 : vector<128x128xf32>
    %cst_12 = arith.constant dense<0.000000e+00> : vector<128xf32>
    %19 = vector.multi_reduction <add>, %18, %cst_12 [1] : vector<128x128xf32> to vector<128xf32>
    %20 = vector.shape_cast %19 : vector<128xf32> to vector<128x1xf32>
    %21 = tpu.reciprocal %20 {approx = true} : vector<128x1xf32> -> vector<128x1xf32>
    %22 = vector.broadcast %21 : vector<128x1xf32> to vector<128x128xf32>
    %23 = arith.mulf %18, %22 : vector<128x128xf32>
    %c0_13 = arith.constant 0 : index
    %c0_14 = arith.constant 0 : index
    %24 = vector.load %arg6[%c0_13, %c0_14] : memref<128x128xf32, #tpu.memory_space<vmem>>, vector<128x128xf32>
    tpu.vector_store %arg6[%c0_13, %c0_14], %23 {strides = array<i32>} : memref<128x128xf32, #tpu.memory_space<vmem>>, vector<128x128xf32>,
    return
  }
  func.func @transform_0(%arg0: i32) -> (i32, i32) {
    %c0_i32 = arith.constant 0 : i32
    %c0_i32_0 = arith.constant 0 : i32
    return %arg0, %c0_i32 : i32, i32
  }
  func.func @transform_1(%arg0: i32) -> (i32, i32) {
    %c0_i32 = arith.constant 0 : i32
    %c0_i32_0 = arith.constant 0 : i32
    %c0_i32_1 = arith.constant 0 : i32
    return %c0_i32, %c0_i32_0 : i32, i32
  }
  func.func @transform_2(%arg0: i32) -> (i32, i32) {
    %c0_i32 = arith.constant 0 : i32
    %c0_i32_0 = arith.constant 0 : i32
    %c0_i32_1 = arith.constant 0 : i32
    return %c0_i32, %c0_i32_0 : i32, i32
  }
  func.func @transform_3(%arg0: i32) -> (i32, i32) {
    %c0_i32 = arith.constant 0 : i32
    %c0_i32_0 = arith.constant 0 : i32
    %c0_i32_1 = arith.constant 0 : i32
    return %c0_i32, %c0_i32_0 : i32, i32
  }
  func.func @transform_4(%arg0: i32) -> (i32, i32) {
    %c0_i32 = arith.constant 0 : i32
    %c0_i32_0 = arith.constant 0 : i32
    %c0_i32_1 = arith.constant 0 : i32
    return %c0_i32, %c0_i32_0 : i32, i32
  }
  func.func @transform_5(%arg0: i32) -> (i32, i32) {
    %c0_i32 = arith.constant 0 : i32
    %c0_i32_0 = arith.constant 0 : i32
    return %arg0, %c0_i32 : i32, i32
  }
}

</mosaic_0001>

<bundles_post_ra>
// kernel: fwd.1
= control target key start
LH: loop header
LB: loop body
LE: loop exit
PB: predicated region body
PF: predicated region fallthrough
CT: control target
= control target key end

     0   :  { %10 = vsyncpa [#allocation3], 0  ;;  %s1946_s0 = inlined_call_operand.hbm [shape: bf16[256,8], index: 0, kind: input, shape index: {}]   ;;  %s1947_s1 = inlined_call_operand.hbm [shape: bf16[8,128], index: 1, kind: input, shape index: {}]   ;;  %s1948_s2 = inlined_call_operand.hbm [shape: f32[1,128], index: 2, kind: input, shape index: {}]   ;;  %s1949_s3 = inlined_call_operand.hbm [shape: bf16[128,128], index: 3, kind: input, shape index: {}]   ;;  %s1950_s4 = inlined_call_operand.hbm [shape: f32[1,128], index: 4, kind: input, shape index: {}]   ;;  %s1951_s5 = inlined_call_operand.hbm [shape: f32[256,128], index: 5, kind: output, shape index: {}]  }
   0x1   :  { %12 = vsyncpa [#allocation3 + $0x1], 0 }
   0x2   :  { %13 = vsyncpa [#allocation6], 0 }
   0x3   :  { %14 = vsyncpa [#allocation9], 0 }
   0x4   :  { %15 = vsyncpa [#allocation4], 0 }
   0x5   :  { %17 = vsyncpa [#allocation4 + $0x1], 0  ;;  %s1536_s18 = smov 0   ;;  %s1538_s19 = smov 0  }
   0x6   :  { %s1540_s20 = smov 0   ;;  %s1542_s21 = smov 0  }
   0x7 LB: > { %s1557_s22 = sadd.s32 4294967295, %s1494_s21   ;;  %s965_s23 = sadd.s32 4294967294, %s1494_s21   ;;  %s1494_s21 = sphi %s1542_s21, %s1974_s21   ;;  %s1490_s20 = sphi %s1540_s20, %s1973_s20   ;;  %s1486_s19 = sphi %s1538_s19, %s1972_s19   ;;  %s1482_s18 = sphi %s1536_s18, %s1971_s18  }
   0x8   : > { %p43_p0 = scmp.ne.s32.totalorder %s1486_s19, %s1482_s18  ;;  %p1952_p1 = scmp.eq.s32.totalorder %s1557_s22, 0 }
   0x9   : > { %p157_p3 = scmp.eq.s32.totalorder %s965_s23, 1  ;;  %p966_p5 = scmp.ge.s32.totalorder %s1494_s21, 1 }
   0xa   : > { %p1566_p4 = por %p1952_p1, %p43_p0  ;;  %p164_p7 = scmp.lt.s32.totalorder %s1494_s21, 3 }
   0xb   : > { %p1571_p6 = por %p157_p3, %p43_p0  ;;  %s1496_s27 = smov [#allocation5]  }
   0xc   : > { %s1955_s24 = scalar_select %p1566_p4, 1, 0 }
   0xd   : > { %s1956_s25 = scalar_select %p1571_p6, 1, 0 }
   0xe   : > { %p1576_p8 = pnand %p966_p5, %p164_p7  ;;  %s177_s28 = sshll.u32 %s1496_s27, 4  ;;  %s178_s28 = int_to_ptr.vmem [resolvable:$true] %s177_s28 }
   0xf   : > { %s1497_s29 = smov [#allocation8]   ;;  %s1498_s7 = smov [#allocation7]  }
  0x10   : > { %s1957_s26 = scalar_select %p1576_p8, 1, 0 }
  0x11   : > { %p1127_p10 = pneg %p1576_p8  ;;  %s198_s30 = sshll.u32 %s1497_s29, 4  ;;  %s1589_s30 = int_to_ptr.vmem [resolvable:$true] %s198_s30 }
  0x12   : > { %s1591_s8 = sshll.u32 %s1498_s7, 4  ;;  %s1278_s11 = scalar_lea.hbm %s1947_s1, 64  ;;  %s189_s8 = int_to_ptr.vmem [resolvable:$true] %s1591_s8 }
  0x13   : > { %p1585_p11 = pnand %p1127_p10, %p1952_p1  ;;  %p1279_p12 = scmp.ne.s32.totalorder %s1947_s1, %s1278_s11 }
  0x14   : > { %p1285_p5 = scmp.lt.u32.totalorder %s1278_s11, %s1947_s1 }
  0x15   : > { %p1601_p13 = pneg %p1585_p11 }
  0x17   : > { %p1281_p0 = pnand %p1601_p13, %p1279_p12 }
  0x19   : > { %p1282_p3 = pneg %p1281_p0 }
  0x1b   : > { %p1287_p7 = pnand %p1285_p5, %p1282_p3 }
  0x1d   : > { %1290 = shalt.err (!%p1287_p7)
}
  0x1e   : > { %s1291_s17 = scalar_lea.vmem %s178_s28, 64  ;;  %p1299_p2 = scmp.lt.s32.totalorder %s178_s28, %s178_s28 }
  0x1f   : > { %p1292_p10 = scmp.ne.s32.totalorder %s178_s28, %s1291_s17  ;;  %p1300_p6 = scmp.lt.s32.totalorder %s1291_s17, %s1291_s17 }
  0x21   : > { %p1294_p9 = pnand %p1292_p10, %p1601_p13  ;;  %p1301_p4 = por %p1300_p6, %p1299_p2 }
  0x23   : > { %p1295_p1 = pneg %p1294_p9 }
  0x25   : > { %p1302_p8 = pnand %p1301_p4, %p1295_p1 }
  0x27   : > { %1305 = shalt.err (!%p1302_p8)
}
  0x28   : > { %1130 = dma.hbm_to_vmem [thread:$0]  (!%p1585_p11), %s1947_s1, 64, %s178_s28, [#allocation6]  }
  0x29   : > { %s1306_s9 = scalar_lea.hbm %s1949_s3, 1024 }
  0x2a   : > { %p1307_p9 = scmp.ne.s32.totalorder %s1949_s3, %s1306_s9  ;;  %p1313_p1 = scmp.lt.u32.totalorder %s1306_s9, %s1949_s3 }
  0x2c   : > { %p1309_p12 = pnand %p1307_p9, %p1601_p13 }
  0x2e   : > { %p1310_p2 = pneg %p1309_p12 }
  0x30   : > { %p1315_p4 = pnand %p1313_p1, %p1310_p2 }
  0x32   : > { %1318 = shalt.err (!%p1315_p4)
}
  0x33   : > { %s1319_s28 = scalar_lea.vmem %s1589_s30, 1024  ;;  %p1327_p3 = scmp.lt.s32.totalorder %s1589_s30, %s1589_s30 }
  0x34   : > { %p1320_p6 = scmp.ne.s32.totalorder %s1589_s30, %s1319_s28  ;;  %p1328_p5 = scmp.lt.s32.totalorder %s1319_s28, %s1319_s28 }
  0x36   : > { %p1322_p8 = pnand %p1320_p6, %p1601_p13  ;;  %p1329_p7 = por %p1328_p5, %p1327_p3 }
  0x38   : > { %p1323_p0 = pneg %p1322_p8 }
  0x3a   : > { %p1330_p10 = pnand %p1329_p7, %p1323_p0 }
  0x3c   : > { %1333 = shalt.err (!%p1330_p10)
}
  0x3d   : > { %s1499_s15 = smov 64   ;;  %s1500_s16 = smov 4  }
  0x3e   : > { %1136 = dma.hbm_to_vmem [thread:$0]  (!%p1585_p11), %s1949_s3, 1024, %s1589_s30, [#allocation9], %s1499_s15, %s1499_s15, %s1500_s16  }
  0x3f   : > { %s1334_s7 = scalar_lea.hbm %s1948_s2, 16 }
  0x40   : > { %p1335_p9 = scmp.ne.s32.totalorder %s1948_s2, %s1334_s7  ;;  %p1341_p1 = scmp.lt.u32.totalorder %s1334_s7, %s1948_s2 }
  0x42   : > { %p1337_p12 = pnand %p1335_p9, %p1601_p13 }
  0x44   : > { %p1338_p2 = pneg %p1337_p12 }
  0x46   : > { %p1343_p4 = pnand %p1341_p1, %p1338_p2 }
  0x48   : > { %1346 = shalt.err (!%p1343_p4)
}
  0x49   : > { %s1347_s13 = scalar_lea.vmem %s189_s8, 16  ;;  %s1354_s30 = scalar_lea.vmem %s189_s8, 32 }
  0x4a   : > { %p1348_p6 = scmp.ne.s32.totalorder %s189_s8, %s1347_s13  ;;  %p1355_p3 = scmp.lt.s32.totalorder %s189_s8, %s189_s8 }
  0x4b   : > { %p1356_p5 = scmp.lt.s32.totalorder %s1354_s30, %s1347_s13 }
  0x4c   : > { %p1350_p8 = pnand %p1348_p6, %p1601_p13 }
  0x4d   : > { %p1357_p7 = por %p1356_p5, %p1355_p3 }
  0x4e   : > { %p1351_p0 = pneg %p1350_p8 }
  0x50   : > { %p1358_p10 = pnand %p1357_p7, %p1351_p0 }
  0x52   : > { %1361 = shalt.err (!%p1358_p10)
}
  0x53   : > { %1133 = dma.hbm_to_vmem [thread:$0]  (!%p1585_p11), %s1948_s2, 16, %s189_s8, [#allocation6]  }
  0x54   : > { %s1501_s23 = smov [#allocation10]   ;;  %s1362_s9 = scalar_lea.hbm %s1950_s4, 16 }
  0x55   : > { %s212_s27 = sshll.u32 %s1501_s23, 4  ;;  %p1363_p9 = scmp.ne.s32.totalorder %s1950_s4, %s1362_s9  ;;  %s213_s27 = int_to_ptr.vmem [resolvable:$true] %s212_s27 }
  0x56   : > { %p1369_p1 = scmp.lt.u32.totalorder %s1362_s9, %s1950_s4 }
  0x57   : > { %p1365_p12 = pnand %p1363_p9, %p1601_p13 }
  0x59   : > { %p1366_p2 = pneg %p1365_p12 }
  0x5b   : > { %p1371_p4 = pnand %p1369_p1, %p1366_p2 }
  0x5d   : > { %1374 = shalt.err (!%p1371_p4)
}
  0x5e   : > { %s1375_s8 = scalar_lea.vmem %s213_s27, 16  ;;  %s1382_s30 = scalar_lea.vmem %s213_s27, 32 }
  0x5f   : > { %p1376_p6 = scmp.ne.s32.totalorder %s213_s27, %s1375_s8  ;;  %p1383_p3 = scmp.lt.s32.totalorder %s213_s27, %s213_s27 }
  0x60   : > { %p1384_p5 = scmp.lt.s32.totalorder %s1382_s30, %s1375_s8 }
  0x61   : > { %p1378_p8 = pnand %p1376_p6, %p1601_p13 }
  0x62   : > { %p1385_p7 = por %p1384_p5, %p1383_p3 }
  0x63   : > { %p1379_p0 = pneg %p1378_p8 }
  0x65   : > { %p1386_p10 = pnand %p1385_p7, %p1379_p0 }
  0x67   : > { %1389 = shalt.err (!%p1386_p10)
}
  0x68   : > { %1139 = dma.hbm_to_vmem [thread:$0]  (!%p1585_p11), %s1950_s4, 16, %s213_s27, [#allocation9]  }
  0x69   : > { %s1681_s14 = sadd.s32 1, %s1494_s21   ;;  %s30_s23 = sadd.s32 1, %s1490_s20 }
  0x6a   : > { %s27_s6 = ssub.s32 %s1494_s21, %s1681_s14  ;;  %p37_p13 = scmp.ne.s32.totalorder %s1490_s20, %s1486_s19 }
  0x6b   : > { %p28_p9 = scmp.eq.s32.totalorder %s27_s6, 0  ;;  %p38_p12 = scmp.eq.s32.totalorder %s1494_s21, 0 }
  0x6c   : > { %p1960_p2 = scmp.eq.s32.totalorder %s1557_s22, 1  ;;  %p1152_p4 = scmp.lt.s32.totalorder %s1494_s21, 2 }
  0x6d   : > { %s1697_s7 = scalar_select %p28_p9, %s1490_s20, %s30_s23  }
  0x6e   : > { %p1691_p1 = por %p1960_p2, %p37_p13  ;;  %p39_p6 = por %p38_p12, %p37_p13 }
  0x6f   : > { %s223_s9 = sand.u32 1, %s1490_s20   ;;  %s1013_s27 = sshll.u32 %s1494_s21, 10 }
  0x70   : > { %s972_s10 = sshll.u32 %s223_s9, 6  ;;  %s1704_s13 = scalar_lea.hbm %s1946_s0, %s1013_s27 }
  0x71   : > { %s227_s8 = scalar_lea.vmem [#allocation2], %s972_s10  ;;  %p1708_p11 = pnand %p1152_p4, %p39_p6 }
  0x72   : > { %s234_s30 = sshll.u32 %s227_s8, 4  ;;  %s1712_s17 = scalar_lea.sflag [#allocation3], %s223_s9  ;;  %s1706_s30 = int_to_ptr.vmem [resolvable:$true] %s234_s30 }
  0x73   : > { %s1390_s23 = scalar_lea.hbm %s1704_s13, 1024  ;;  %p1392_p0 = pneg %p1708_p11 }
  0x74   : > { %p1391_p8 = scmp.ne.s32.totalorder %s1704_s13, %s1390_s23  ;;  %s1395_s27 = scalar_lea.hbm %s1946_s0, 2048 }
  0x75   : > { %p1396_p7 = scmp.lt.u32.totalorder %s1704_s13, %s1946_s0  ;;  %p1397_p10 = scmp.lt.u32.totalorder %s1395_s27, %s1390_s23 }
  0x76   : > { %p1393_p3 = pnand %p1392_p0, %p1391_p8  ;;  %p1399_p9 = scmp.lt.u32.totalorder %s1390_s23, %s1704_s13 }
  0x77   : > { %p1398_p13 = por %p1397_p10, %p1396_p7 }
  0x78   : > { %p1394_p5 = pneg %p1393_p3 }
  0x79   : > { %p1400_p12 = por %p1399_p9, %p1398_p13 }
  0x7b   : > { %p1401_p2 = pnand %p1400_p12, %p1394_p5 }
  0x7d   : > { %1404 = shalt.err (!%p1401_p2)
}
  0x7e   : > { %s1405_s9 = scalar_lea.vmem %s1706_s30, 1024  ;;  %s1502_s8 = smov [#allocation2]  }
  0x7f   : > { %p1406_p4 = scmp.ne.s32.totalorder %s1706_s30, %s1405_s9  ;;  %s1410_s6 = sshll.u32 %s1502_s8, 4  ;;  %s1411_s6 = int_to_ptr.vmem [resolvable:$false] %s1410_s6 }
  0x80   : > { %s1412_s10 = scalar_lea.vmem %s1411_s6, 2048  ;;  %p1413_p3 = scmp.lt.s32.totalorder %s1706_s30, %s1411_s6 }
  0x81   : > { %p1408_p6 = pnand %p1406_p4, %p1392_p0  ;;  %p1414_p7 = scmp.lt.s32.totalorder %s1412_s10, %s1405_s9 }
  0x83   : > { %p1409_p8 = pneg %p1408_p6  ;;  %p1415_p10 = por %p1414_p7, %p1413_p3 }
  0x85   : > { %p1416_p13 = pnand %p1415_p10, %p1409_p8 }
  0x87   : > { %1419 = shalt.err (!%p1416_p13)
}
  0x88   : > { %1143 = dma.hbm_to_vmem [thread:$0]  (!%p1708_p11), %s1704_s13, 1024, %s1706_s30, %s1712_s17, %s1499_s15, %s1499_s15, %s1500_s16  }
  0x89   : > { %p1963_p0 = scmp.ne.s32.totalorder %s1957_s26, 0 }
  0x8a   : > { %s1746_s23 = sand.u32 (!%p1963_p0), 1, %s1486_s19   ;;  %p1964_p5 = scmp.ne.s32.totalorder (!%p1963_p0), %s1955_s24, 0 }
  0x8b   : > { %246 = sbr.rel (%p1963_p0) target bundleno = 954 (0x3ba), region = 40  ;;  %s976_s27 = sshll.u32 (!%p1963_p0), %s1746_s23, 6 }
  0x8c   : > { %s249_s11 = scalar_lea.sflag (!%p1963_p0), [#allocation3], %s1746_s23  ;;  %s1750_s12 = scalar_lea.vmem (!%p1963_p0), [#allocation2], %s976_s27 }
  0x92   : > { %1465 = dma.done.wait (%p1964_p5), %s249_s11, 1024  }
  0x93   : > { %1467 = vsyncadd (%p1964_p5), %s249_s11, 4294966272  ;;  %p1965_p11 = scmp.eq.s32.totalorder %s1557_s22, 0 }
  0x95   : > { %1469 = dma.done.wait (%p1965_p11), [#allocation6], 80   ;;  %p1966_p9 = pmov %p1965_p11 }
  0x97   : > { %1471 = vsyncadd (%p1966_p9), [#allocation6], 4294967216  ;;  %p1967_p12 = pmov %p1966_p9 }
  0x98   : > { %p1968_p2 = pmov %p1966_p9 }
  0x99   : > { %1473 = dma.done.wait (%p1967_p12), [#allocation9], 1040  }
  0x9a   : > { %1475 = vsyncadd (%p1968_p2), [#allocation9], 4294966256  ;;  %vm387_vm0 = vcmask 1043456   ;;  %vm362_vm1 = vcmask 64512   ;;  %v314_v0 = vld [vmem:[#allocation5] sm:$0xf] }
  0x9b   : > { %1106 = vmatprep.subr.msk.bf16.mxu0 %vm387_vm0, %v314_v0  ;;  %v389_v1 = vsel %vm387_vm0, %v314_v0, 0  ;;  %v1198_v2 = vld [vmem:[%s1750_s12] sm:$0xff]   ;;  %v1199_v3 = vld [vmem:[%s1750_s12 + $0x8] sm:$0xff]   ;;  %v1200_v4 = vld [vmem:[%s1750_s12 + $0x10] sm:$0xff]   ;;  %s981_s24 = sshll.u32 %s1746_s23, 7  ;;  %s1014_s15 = sshll.u32 %s1557_s22, 11 }
  0x9c   : > { %1041 = vmatpush3.bf16.msra.mxu0 %v389_v1  ;;  %1042 = vmatprep.mubr.msk.bf16.mxu0 %vm362_vm1, %v1198_v2  ;;  %v1201_v5 = vld [vmem:[%s1750_s12 + $0x18] sm:$0xff]   ;;  %v1202_v6 = vld [vmem:[%s1750_s12 + $0x20] sm:$0xff]   ;;  %v1207_v8 = vld [vmem:[#allocation8 + $0x8] sm:$0xff]   ;;  %s1862_s26 = scalar_lea.vmem [#allocation11], %s981_s24  ;;  %s1898_s28 = scalar_lea.hbm %s1951_s5, %s1014_s15 }
  0x9d   : > { %v1206_v7 = vld [vmem:[#allocation8] sm:$0xff]   ;;  %v1208_v9 = vld [vmem:[#allocation8 + $0x10] sm:$0xff]   ;;  %v1209_v11 = vld [vmem:[#allocation8 + $0x18] sm:$0xff]   ;;  %s854_s16 = sshll.u32 %s1862_s26, 4  ;;  %s841_s22 = scalar_lea.sflag [#allocation4], %s1746_s23  ;;  %s1900_s16 = int_to_ptr.vmem [resolvable:$true] %s854_s16 }
  0x9e   : > { %1058 = vmatprep.subr.bf16.mxu0 %v1206_v7  ;;  %1090 = vmatprep.subr.bf16.mxu1 %v1206_v7  ;;  %v1203_v10 = vld [vmem:[%s1750_s12 + $0x28] sm:$0xff]   ;;  %v1204_v12 = vld [vmem:[%s1750_s12 + $0x30] sm:$0xff]   ;;  %v1205_v14 = vld [vmem:[%s1750_s12 + $0x38] sm:$0xff]   ;;  %s1420_s17 = scalar_lea.vmem %s1900_s16, 2048  ;;  %s1503_s9 = smov [#allocation11]  }
  0x9f   : > { %1043 = vmatmul.mubr.msk.bf16.vlgmr.msra.gmra.mrb[0].mxu0 %vm362_vm1, %v1199_v3  ;;  %1098 = vmatpush3.bf16.msra.mxu1 %v1206_v7  ;;  %v1210_v13 = vld [vmem:[#allocation8 + $0x20] sm:$0xff]   ;;  %v1211_v15 = vld [vmem:[#allocation8 + $0x28] sm:$0xff]   ;;  %v1212_v16 = vld [vmem:[#allocation8 + $0x30] sm:$0xff]   ;;  %p1421_p4 = scmp.ne.s32.totalorder %s1900_s16, %s1420_s17  ;;  %s1424_s8 = sshll.u32 %s1503_s9, 4  ;;  %s1425_s8 = int_to_ptr.vmem [resolvable:$false] %s1424_s8 }
  0xa0   : > { %1046 = vmatprep.mubr.msk.bf16.mxu0 %vm362_vm1, %v1200_v4  ;;  %1059 = vmatpush3.bf16.msra.mxu0 %v1206_v7  ;;  %v1213_v17 = vld [vmem:[#allocation8 + $0x38] sm:$0xff]   ;;  %s1426_s6 = scalar_lea.vmem %s1425_s8, 4096  ;;  %p1427_p3 = scmp.lt.s32.totalorder %s1900_s16, %s1425_s8 }
  0xa1   : > { %1060 = vmatprep.subr.bf16.mxu0 %v1207_v8  ;;  %1091 = vmatprep.subr.bf16.mxu1 %v1207_v8  ;;  %v982_v18 = vld [vmem:[#allocation7] ss:$0 sm:$0xff]  ;;  %p1422_p6 = pnand %p1421_p4, %p1691_p1  ;;  %p1428_p7 = scmp.lt.s32.totalorder %s1426_s6, %s1420_s17 }
  0xa3   : > { %1099 = vmatpush3.bf16.msra.mxu1 %v1207_v8  ;;  %p1423_p8 = pneg %p1422_p6  ;;  %p1429_p10 = por %p1428_p7, %p1427_p3 }
  0xa4   : > { %1061 = vmatpush3.bf16.msra.mxu0 %v1207_v8  ;;  %1092 = vmatprep.subr.bf16.mxu1 %v1208_v9 }
  0xa5   : > { %1062 = vmatprep.subr.bf16.mxu0 %v1208_v9  ;;  %p1430_p13 = pnand %p1429_p10, %p1423_p8 }
  0xa7   : > { %1047 = vmatmul.mubr.msk.bf16.gmra.mrb[4].mxu0 %vm362_vm1, %v1201_v5  ;;  %1100 = vmatpush3.bf16.msra.mxu1 %v1208_v9 }
  0xa8   : > { %1050 = vmatprep.mubr.msk.bf16.mxu0 %vm362_vm1, %v1202_v6  ;;  %1063 = vmatpush3.bf16.msra.mxu0 %v1208_v9 }
  0xa9   : > { %1064 = vmatprep.subr.bf16.mxu0 %v1209_v11  ;;  %1093 = vmatprep.subr.bf16.mxu1 %v1209_v11 }
  0xab   : > { %1101 = vmatpush3.bf16.msra.mxu1 %v1209_v11 }
  0xac   : > { %1065 = vmatpush3.bf16.msra.mxu0 %v1209_v11  ;;  %1094 = vmatprep.subr.bf16.mxu1 %v1210_v13  ;;  %v999_v11 = vld [vmem:[#allocation10] ss:$0 sm:$0xff] }
  0xad   : > { %1066 = vmatprep.subr.bf16.mxu0 %v1210_v13 }
  0xaf   : > { %1051 = vmatmul.mubr.msk.bf16.gmra.mrb[8].mxu0 %vm362_vm1, %v1203_v10  ;;  %1102 = vmatpush3.bf16.msra.mxu1 %v1210_v13 }
  0xb0   : > { %1054 = vmatprep.mubr.msk.bf16.mxu0 %vm362_vm1, %v1204_v12  ;;  %1067 = vmatpush3.bf16.msra.mxu0 %v1210_v13 }
  0xb1   : > { %1068 = vmatprep.subr.bf16.mxu0 %v1211_v15  ;;  %1095 = vmatprep.subr.bf16.mxu1 %v1211_v15 }
  0xb3   : > { %1103 = vmatpush3.bf16.msra.mxu1 %v1211_v15 }
  0xb4   : > { %1069 = vmatpush3.bf16.msra.mxu0 %v1211_v15  ;;  %1096 = vmatprep.subr.bf16.mxu1 %v1212_v16 }
  0xb5   : > { %1070 = vmatprep.subr.bf16.mxu0 %v1212_v16 }
  0xb7   : > { %1055 = vmatmul.mubr.msk.bf16.gmra.mrb[12].mxu0 %vm362_vm1, %v1205_v14  ;;  %1104 = vmatpush3.bf16.msra.mxu1 %v1212_v16 }
  0xb8   : > { %1071 = vmatpush3.bf16.msra.mxu0 %v1212_v16  ;;  %1097 = vmatprep.subr.bf16.mxu1 %v1213_v17 }
  0xb9   : > { %1072 = vmatprep.subr.bf16.mxu0 %v1213_v17 }
  0xbb   : > { %1105 = vmatpush3.bf16.msra.mxu1 %v1213_v17 }
  0xbc   : > { %1073 = vmatpush3.bf16.msra.mxu0 %v1213_v17 }
 0x172   : > { %v1044_v19 = vpop.f32.mrb[0].mxu0 }
 0x173   : > { %v434_v20 = vadd.f32 %v1044_v19, %v982_v18  ;;  %v425_v21 = vpop.f32.mrb[1].mxu0 }
 0x174   : > { %v426_v22 = vadd.f32 %v982_v18, %v425_v21  ;;  %v1045_v23 = vpop.f32.mrb[2].mxu0 }
 0x175   : > { %v437_v24 = vadd.f32 %v1045_v23, %v982_v18  ;;  %v428_v25 = vpop.f32.mrb[3].mxu0  ;;  %v490_v27 = vmax.f32 %v434_v20, 0.0 }
 0x176   : > { %v429_v26 = vadd.f32 %v982_v18, %v428_v25  ;;  %v488_v29 = vmax.f32 %v426_v22, 0.0 }
 0x177   : > { %v491_v28 = vmax.f32 %v437_v24, 0.0 }
 0x178   : > { %v489_v30 = vmax.f32 %v429_v26, 0.0 }
 0x179   : > { %v505_v31 = vpack.c.bf16 %v491_v28, %v490_v27 }
 0x17a   : > { %v504_v32 = vpack.c.bf16 %v489_v30, %v488_v29  ;;  %v1048_v33 = vpop.f32.mrb[4].mxu0 }
 0x17b   : > { %v450_v34 = vadd.f32 %v1048_v33, %v982_v18  ;;  %v441_v35 = vpop.f32.mrb[5].mxu0 }
 0x17c   : > { %v442_v36 = vadd.f32 %v982_v18, %v441_v35  ;;  %v1049_v37 = vpop.f32.mrb[6].mxu0  ;;  %1074 = vmatprep.mubr.bf16.mxu0 %v504_v32 }
 0x17d   : > { %v494_v38 = vmax.f32 %v450_v34, 0.0  ;;  %v453_v39 = vadd.f32 %v1049_v37, %v982_v18  ;;  %v444_v40 = vpop.f32.mrb[7].mxu0  ;;  %1075 = vmatmul.mubr.bf16.vlgmr.msra.gmra.mrb[16].mxu0 %v505_v31 }
 0x17e   : > { %v445_v41 = vadd.f32 %v982_v18, %v444_v40  ;;  %v492_v43 = vmax.f32 %v442_v36, 0.0 }
 0x17f   : > { %v495_v42 = vmax.f32 %v453_v39, 0.0 }
 0x180   : > { %v493_v44 = vmax.f32 %v445_v41, 0.0 }
 0x181   : > { %v507_v45 = vpack.c.bf16 %v495_v42, %v494_v38 }
 0x182   : > { %v1052_v46 = vpop.f32.mrb[8].mxu0  ;;  %v506_v47 = vpack.c.bf16 %v493_v44, %v492_v43 }
 0x183   : > { %v466_v48 = vadd.f32 %v1052_v46, %v982_v18  ;;  %v457_v49 = vpop.f32.mrb[9].mxu0 }
 0x184   : > { %v458_v50 = vadd.f32 %v982_v18, %v457_v49  ;;  %v1053_v51 = vpop.f32.mrb[10].mxu0  ;;  %1078 = vmatprep.mubr.bf16.mxu1 %v506_v47 }
 0x185   : > { %v498_v52 = vmax.f32 %v466_v48, 0.0  ;;  %v469_v53 = vadd.f32 %v1053_v51, %v982_v18  ;;  %v460_v54 = vpop.f32.mrb[11].mxu0  ;;  %1079 = vmatmul.mubr.bf16.vlgmr.msra.gmra.mrb[0].mxu1 %v507_v45 }
 0x186   : > { %v461_v55 = vadd.f32 %v982_v18, %v460_v54  ;;  %v496_v57 = vmax.f32 %v458_v50, 0.0 }
 0x187   : > { %v499_v56 = vmax.f32 %v469_v53, 0.0 }
 0x188   : > { %v497_v58 = vmax.f32 %v461_v55, 0.0 }
 0x189   : > { %v509_v59 = vpack.c.bf16 %v499_v56, %v498_v52 }
 0x18a   : > { %v508_v60 = vpack.c.bf16 %v497_v58, %v496_v57  ;;  %v1056_v61 = vpop.f32.mrb[12].mxu0 }
 0x18b   : > { %v482_v62 = vadd.f32 %v1056_v61, %v982_v18  ;;  %v473_v63 = vpop.f32.mrb[13].mxu0 }
 0x18c   : > { %v474_v0 = vadd.f32 %v982_v18, %v473_v63  ;;  %v1057_v1 = vpop.f32.mrb[14].mxu0  ;;  %1082 = vmatprep.mubr.bf16.mxu1 %v508_v60 }
 0x18d   : > { %v502_v2 = vmax.f32 %v482_v62, 0.0  ;;  %v485_v3 = vadd.f32 %v1057_v1, %v982_v18  ;;  %v476_v4 = vpop.f32.mrb[15].mxu0  ;;  %1083 = vmatmul.mubr.bf16.gmra.mrb[4].mxu1 %v509_v59 }
 0x18e   : > { %v477_v5 = vadd.f32 %v982_v18, %v476_v4  ;;  %v500_v7 = vmax.f32 %v474_v0, 0.0 }
 0x18f   : > { %v503_v6 = vmax.f32 %v485_v3, 0.0 }
 0x190   : > { %v501_v8 = vmax.f32 %v477_v5, 0.0 }
 0x191   : > { %v511_v9 = vpack.c.bf16 %v503_v6, %v502_v2 }
 0x192   : > { %v510_v10 = vpack.c.bf16 %v501_v8, %v500_v7 }
 0x194   : > { %1086 = vmatprep.mubr.bf16.mxu1 %v510_v10 }
 0x195   : > { %1087 = vmatmul.mubr.bf16.gmra.mrb[8].mxu1 %v511_v9 }
 0x250   : > { %v1076_v12 = vpop.f32.mrb[16].mxu0 }
 0x251   : > { %v626_v13 = vadd.f32 %v1076_v12, %v999_v11  ;;  %v617_v14 = vpop.f32.mrb[17].mxu0 }
 0x252   : > { %v618_v15 = vadd.f32 %v999_v11, %v617_v14  ;;  %v1077_v16 = vpop.f32.mrb[18].mxu0 }
 0x253   : > { %684 = vmax.xlane.f32.xlu1 %v626_v13  ;;  %v620_v17 = vpop.f32.mrb[19].mxu0  ;;  %v629_v19 = vadd.f32 %v1077_v16, %v999_v11 }
 0x254   : > { %680 = vmax.xlane.f32.xlu0 %v618_v15  ;;  %v621_v20 = vadd.f32 %v999_v11, %v620_v17 }
 0x257   : > { %686 = vmax.xlane.f32.xlu1 %v629_v19 }
 0x258   : > { %v1080_v18 = vpop.f32.mrb[0].mxu1  ;;  %682 = vmax.xlane.f32.xlu0 %v621_v20 }
 0x259   : > { %v642_v21 = vadd.f32 %v1080_v18, %v999_v11  ;;  %v633_v22 = vpop.f32.mrb[1].mxu1 }
 0x25a   : > { %v1081_v23 = vpop.f32.mrb[2].mxu1  ;;  %v634_v26 = vadd.f32 %v999_v11, %v633_v22 }
 0x25b   : > { %v645_v24 = vadd.f32 %v1081_v23, %v999_v11  ;;  %v636_v25 = vpop.f32.mrb[3].mxu1 }
 0x25c   : > { %692 = vmax.xlane.f32.xlu0 %v642_v21  ;;  %v637_v27 = vadd.f32 %v999_v11, %v636_v25 }
 0x25d   : > { %694 = vmax.xlane.f32.xlu1 %v645_v24 }
 0x260   : > { %v1084_v28 = vpop.f32.mrb[4].mxu1  ;;  %688 = vmax.xlane.f32.xlu0 %v634_v26 }
 0x261   : > { %v1780_v29 = vadd.f32 %v1084_v28, %v999_v11  ;;  %v649_v30 = vpop.f32.mrb[5].mxu1  ;;  %690 = vmax.xlane.f32.xlu1 %v637_v27 }
 0x262   : > { %v1085_v31 = vpop.f32.mrb[6].mxu1  ;;  %v1786_v34 = vadd.f32 %v999_v11, %v649_v30 }
 0x263   : > { %v1782_v32 = vadd.f32 %v1085_v31, %v999_v11  ;;  %v652_v33 = vpop.f32.mrb[7].mxu1 }
 0x264   : > { %700 = vmax.xlane.f32.xlu0 %v1780_v29  ;;  %v1788_v35 = vadd.f32 %v999_v11, %v652_v33 }
 0x265   : > { %702 = vmax.xlane.f32.xlu1 %v1782_v32 }
 0x268   : > { %v1088_v36 = vpop.f32.mrb[8].mxu1  ;;  %696 = vmax.xlane.f32.xlu0 %v1786_v34 }
 0x269   : > { %v665_v37 = vpop.f32.mrb[9].mxu1  ;;  %698 = vmax.xlane.f32.xlu1 %v1788_v35  ;;  %v1797_v42 = vadd.f32 %v1088_v36, %v999_v11 }
 0x26a   : > { %v1792_v38 = vadd.f32 %v999_v11, %v665_v37  ;;  %v1089_v39 = vpop.f32.mrb[10].mxu1 }
 0x26b   : > { %v668_v40 = vpop.f32.mrb[11].mxu1  ;;  %v1800_v43 = vadd.f32 %v1089_v39, %v999_v11 }
 0x26c   : > { %v1794_v41 = vadd.f32 %v999_v11, %v668_v40  ;;  %704 = vmax.xlane.f32.xlu0 %v1792_v38 }
 0x26e   : > { %706 = vmax.xlane.f32.xlu1 %v1794_v41 }
 0x270   : > { %708 = vmax.xlane.f32.xlu0 %v1797_v42 }
 0x272   : > { %710 = vmax.xlane.f32.xlu1 %v1800_v43 }
 0x2e0   : > { %v685_v44 = vpop.xlane.xlu1 %684 }
 0x2e1   : > { %v714_v45 = vsub.f32 %v626_v13, %v685_v44  ;;  %v681_v46 = vpop.xlane.xlu0 %680 }
 0x2e2   : > { %v712_v47 = vsub.f32 %v618_v15, %v681_v46 }
 0x2e3   : > { %v732_v48 = vmul.f32 1.442695, %v714_v45 }
 0x2e4   : > { %v728_v49 = vmul.f32 1.442695, %v712_v47  ;;  %v687_v50 = vpop.xlane.xlu1 %686 }
 0x2e5   : > { %1214 = vpow2.f32 %v732_v48  ;;  %v715_v51 = vsub.f32 %v629_v19, %v687_v50  ;;  %v683_v52 = vpop.xlane.xlu0 %682 }
 0x2e6   : > { %v713_v53 = vsub.f32 %v621_v20, %v683_v52  ;;  %1216 = vpow2.f32 %v728_v49 }
 0x2e7   : > { %v734_v54 = vmul.f32 1.442695, %v715_v51 }
 0x2e8   : > { %v730_v55 = vmul.f32 1.442695, %v713_v53 }
 0x2e9   : > { %1218 = vpow2.f32 %v734_v54  ;;  %v693_v56 = vpop.xlane.xlu0 %692 }
 0x2ea   : > { %v718_v57 = vsub.f32 %v642_v21, %v693_v56  ;;  %v695_v58 = vpop.xlane.xlu1 %694  ;;  %1220 = vpow2.f32 %v730_v55 }
 0x2eb   : > { %v719_v59 = vsub.f32 %v645_v24, %v695_v58 }
 0x2ec   : > { %v740_v60 = vmul.f32 1.442695, %v718_v57 }
 0x2ed   : > { %v742_v61 = vmul.f32 1.442695, %v719_v59  ;;  %v689_v62 = vpop.xlane.xlu0 %688 }
 0x2ee   : > { %1222 = vpow2.f32 %v740_v60  ;;  %v716_v63 = vsub.f32 %v634_v26, %v689_v62  ;;  %v691_v0 = vpop.xlane.xlu1 %690 }
 0x2ef   : > { %v1804_v1 = vpop.eup %1214  ;;  %v717_v2 = vsub.f32 %v637_v27, %v691_v0  ;;  %1224 = vpow2.f32 %v742_v61 }
 0x2f0   : > { %v736_v3 = vmul.f32 1.442695, %v716_v63  ;;  %764 = vadd.xlane.f32.xlu0 %v1804_v1  ;;  %v1807_v6 = vpop.eup %1216 }
 0x2f1   : > { %v738_v4 = vmul.f32 1.442695, %v717_v2  ;;  %v701_v5 = vpop.xlane.xlu0 %700 }
 0x2f2   : > { %1226 = vpow2.f32 %v736_v3  ;;  %v722_v7 = vsub.f32 %v1780_v29, %v701_v5  ;;  %v703_v8 = vpop.xlane.xlu1 %702 }
 0x2f3   : > { %v1810_v9 = vpop.eup %1218  ;;  %v723_v10 = vsub.f32 %v1782_v32, %v703_v8  ;;  %1228 = vpow2.f32 %v738_v4 }
 0x2f4   : > { %v748_v11 = vmul.f32 1.442695, %v722_v7  ;;  %766 = vadd.xlane.f32.xlu1 %v1810_v9  ;;  %760 = vadd.xlane.f32.xlu0 %v1807_v6  ;;  %v1816_v16 = vpop.eup %1220 }
 0x2f5   : > { %v750_v12 = vmul.f32 1.442695, %v723_v10  ;;  %v697_v13 = vpop.xlane.xlu0 %696 }
 0x2f6   : > { %1230 = vpow2.f32 %v748_v11  ;;  %v720_v14 = vsub.f32 %v1786_v34, %v697_v13  ;;  %v699_v15 = vpop.xlane.xlu1 %698 }
 0x2f7   : > { %v721_v17 = vsub.f32 %v1788_v35, %v699_v15  ;;  %1232 = vpow2.f32 %v750_v12 }
 0x2f8   : > { %v1819_v19 = vpop.eup %1222  ;;  %v744_v20 = vmul.f32 1.442695, %v720_v14  ;;  %762 = vadd.xlane.f32.xlu1 %v1816_v16 }
 0x2f9   : > { %v746_v18 = vmul.f32 1.442695, %v721_v17  ;;  %772 = vadd.xlane.f32.xlu0 %v1819_v19  ;;  %v705_v21 = vpop.xlane.xlu0 %704  ;;  %v1824_v23 = vpop.eup %1224 }
 0x2fa   : > { %1234 = vpow2.f32 %v744_v20  ;;  %v724_v22 = vsub.f32 %v1792_v38, %v705_v21 }
 0x2fb   : > { %v707_v24 = vpop.xlane.xlu1 %706  ;;  %1236 = vpow2.f32 %v746_v18 }
 0x2fc   : > { %v1826_v25 = vpop.eup %1226  ;;  %v752_v26 = vmul.f32 1.442695, %v724_v22  ;;  %v725_v27 = vsub.f32 %v1794_v41, %v707_v24  ;;  %774 = vadd.xlane.f32.xlu1 %v1824_v23 }
 0x2fd   : > { %768 = vadd.xlane.f32.xlu0 %v1826_v25  ;;  %v709_v28 = vpop.xlane.xlu0 %708  ;;  %v1832_v31 = vpop.eup %1228 }
 0x2fe   : > { %1238 = vpow2.f32 %v752_v26  ;;  %v754_v29 = vmul.f32 1.442695, %v725_v27  ;;  %v726_v30 = vsub.f32 %v1797_v42, %v709_v28 }
 0x2ff   : > { %v711_v32 = vpop.xlane.xlu1 %710 }
 0x300   : > { %v1834_v33 = vpop.eup %1230  ;;  %1240 = vpow2.f32 %v754_v29  ;;  %v756_v34 = vmul.f32 1.442695, %v726_v30  ;;  %v727_v35 = vsub.f32 %v1800_v43, %v711_v32  ;;  %770 = vadd.xlane.f32.xlu1 %v1832_v31 }
 0x301   : > { %780 = vadd.xlane.f32.xlu0 %v1834_v33  ;;  %v1839_v37 = vpop.eup %1232 }
 0x302   : > { %1242 = vpow2.f32 %v756_v34  ;;  %v758_v36 = vmul.f32 1.442695, %v727_v35 }
 0x304   : > { %v1841_v38 = vpop.eup %1234  ;;  %1244 = vpow2.f32 %v758_v36  ;;  %782 = vadd.xlane.f32.xlu1 %v1839_v37 }
 0x305   : > { %776 = vadd.xlane.f32.xlu0 %v1841_v38  ;;  %v1845_v39 = vpop.eup %1236 }
 0x308   : > { %v1847_v40 = vpop.eup %1238  ;;  %778 = vadd.xlane.f32.xlu1 %v1845_v39 }
 0x309   : > { %784 = vadd.xlane.f32.xlu0 %v1847_v40 }
 0x30a   : > { %v1851_v41 = vpop.eup %1240 }
 0x30c   : > { %v1853_v42 = vpop.eup %1242  ;;  %786 = vadd.xlane.f32.xlu1 %v1851_v41 }
 0x30d   : > { %788 = vadd.xlane.f32.xlu0 %v1853_v42 }
 0x30e   : > { %v1857_v43 = vpop.eup %1244 }
 0x310   : > { %790 = vadd.xlane.f32.xlu1 %v1857_v43 }
 0x37d   : > { %v765_v44 = vpop.xlane.xlu0 %764 }
 0x37e   : > { %1246 = vrcp.f32 %v765_v44 }
 0x381   : > { %v767_v45 = vpop.xlane.xlu1 %766  ;;  %v761_v46 = vpop.xlane.xlu0 %760 }
 0x382   : > { %1248 = vrcp.f32 %v767_v45 }
 0x383   : > { %1250 = vrcp.f32 %v761_v46 }
 0x385   : > { %v763_v47 = vpop.xlane.xlu1 %762 }
 0x386   : > { %1252 = vrcp.f32 %v763_v47  ;;  %v773_v48 = vpop.xlane.xlu0 %772 }
 0x387   : > { %1254 = vrcp.f32 %v773_v48 }
 0x388   : > { %v1247_v49 = vpop.eup %1246 }
 0x389   : > { %v810_v50 = vmul.f32 %v1247_v49, %v1804_v1  ;;  %v775_v51 = vpop.xlane.xlu1 %774 }
 0x38a   : > { %1256 = vrcp.f32 %v775_v51  ;;  %v769_v52 = vpop.xlane.xlu0 %768 }
 0x38b   : > { %826 = vst [vmem:[%s1862_s26 + $0x10] sm:$0xff] %v810_v50  ;;  %1258 = vrcp.f32 %v769_v52 }
 0x38c   : > { %v1249_v53 = vpop.eup %1248 }
 0x38d   : > { %v1251_v54 = vpop.eup %1250  ;;  %v811_v55 = vmul.f32 %v1249_v53, %v1810_v9  ;;  %v771_v56 = vpop.xlane.xlu1 %770 }
 0x38e   : > { %v808_v57 = vmul.f32 %v1251_v54, %v1807_v6  ;;  %1260 = vrcp.f32 %v771_v56  ;;  %v781_v58 = vpop.xlane.xlu0 %780 }
 0x38f   : > { %827 = vst [vmem:[%s1862_s26 + $0x18] sm:$0xff] %v811_v55  ;;  %1262 = vrcp.f32 %v781_v58 }
 0x390   : > { %v1253_v59 = vpop.eup %1252  ;;  %824 = vst [vmem:[%s1862_s26] sm:$0xff] %v808_v57 }
 0x391   : > { %v1255_v60 = vpop.eup %1254  ;;  %v809_v61 = vmul.f32 %v1253_v59, %v1816_v16  ;;  %v783_v62 = vpop.xlane.xlu1 %782 }
 0x392   : > { %v814_v63 = vmul.f32 %v1255_v60, %v1819_v19  ;;  %1264 = vrcp.f32 %v783_v62  ;;  %v777_v0 = vpop.xlane.xlu0 %776 }
 0x393   : > { %825 = vst [vmem:[%s1862_s26 + $0x8] sm:$0xff] %v809_v61  ;;  %1266 = vrcp.f32 %v777_v0 }
 0x394   : > { %v1257_v1 = vpop.eup %1256  ;;  %830 = vst [vmem:[%s1862_s26 + $0x30] sm:$0xff] %v814_v63 }
 0x395   : > { %v1259_v2 = vpop.eup %1258  ;;  %v815_v3 = vmul.f32 %v1257_v1, %v1824_v23  ;;  %v779_v4 = vpop.xlane.xlu1 %778 }
 0x396   : > { %v812_v5 = vmul.f32 %v1259_v2, %v1826_v25  ;;  %1268 = vrcp.f32 %v779_v4  ;;  %v785_v6 = vpop.xlane.xlu0 %784 }
 0x397   : > { %831 = vst [vmem:[%s1862_s26 + $0x38] sm:$0xff] %v815_v3  ;;  %1270 = vrcp.f32 %v785_v6 }
 0x398   : > { %v1261_v7 = vpop.eup %1260  ;;  %828 = vst [vmem:[%s1862_s26 + $0x20] sm:$0xff] %v812_v5 }
 0x399   : > { %v1263_v8 = vpop.eup %1262  ;;  %v813_v9 = vmul.f32 %v1261_v7, %v1832_v31  ;;  %v787_v10 = vpop.xlane.xlu1 %786 }
 0x39a   : > { %v818_v11 = vmul.f32 %v1263_v8, %v1834_v33  ;;  %1272 = vrcp.f32 %v787_v10  ;;  %v789_v12 = vpop.xlane.xlu0 %788 }
 0x39b   : > { %829 = vst [vmem:[%s1862_s26 + $0x28] sm:$0xff] %v813_v9  ;;  %1274 = vrcp.f32 %v789_v12 }
 0x39c   : > { %v1265_v13 = vpop.eup %1264  ;;  %834 = vst [vmem:[%s1862_s26 + $0x50] sm:$0xff] %v818_v11 }
 0x39d   : > { %v1267_v14 = vpop.eup %1266  ;;  %v819_v15 = vmul.f32 %v1265_v13, %v1839_v37  ;;  %v791_v16 = vpop.xlane.xlu1 %790 }
 0x39e   : > { %v816_v17 = vmul.f32 %v1267_v14, %v1841_v38  ;;  %1276 = vrcp.f32 %v791_v16 }
 0x39f   : > { %835 = vst [vmem:[%s1862_s26 + $0x58] sm:$0xff] %v819_v15 }
 0x3a0   : > { %v1269_v19 = vpop.eup %1268  ;;  %832 = vst [vmem:[%s1862_s26 + $0x40] sm:$0xff] %v816_v17 }
 0x3a1   : > { %v1271_v20 = vpop.eup %1270  ;;  %v817_v18 = vmul.f32 %v1269_v19, %v1845_v39 }
 0x3a2   : > { %v820_v21 = vmul.f32 %v1271_v20, %v1847_v40 }
 0x3a3   : > { %833 = vst [vmem:[%s1862_s26 + $0x48] sm:$0xff] %v817_v18 }
 0x3a4   : > { %v1273_v22 = vpop.eup %1272  ;;  %836 = vst [vmem:[%s1862_s26 + $0x60] sm:$0xff] %v820_v21 }
 0x3a5   : > { %v1275_v23 = vpop.eup %1274  ;;  %v821_v24 = vmul.f32 %v1273_v22, %v1851_v41 }
 0x3a6   : > { %v822_v25 = vmul.f32 %v1275_v23, %v1853_v42 }
 0x3a7   : > { %837 = vst [vmem:[%s1862_s26 + $0x68] sm:$0xff] %v821_v24 }
 0x3a8   : > { %v1277_v26 = vpop.eup %1276  ;;  %838 = vst [vmem:[%s1862_s26 + $0x70] sm:$0xff] %v822_v25 }
 0x3a9   : > { %v823_v27 = vmul.f32 %v1277_v26, %v1857_v43 }
 0x3ab   : > { %839 = vst [vmem:[%s1862_s26 + $0x78] sm:$0xff] %v823_v27 }
 0x3ac   : > { %1433 = shalt.err (!%p1430_p13)
}
 0x3ad   : > { %s1434_s10 = scalar_lea.hbm %s1898_s28, 2048  ;;  %s1438_s12 = scalar_lea.hbm %s1951_s5, 4096 }
 0x3ae   : > { %p1435_p0 = scmp.ne.s32.totalorder %s1898_s28, %s1434_s10  ;;  %p1439_p9 = scmp.lt.u32.totalorder %s1898_s28, %s1951_s5 }
 0x3af   : > { %p1440_p12 = scmp.lt.u32.totalorder %s1438_s12, %s1434_s10  ;;  %p1442_p4 = scmp.lt.u32.totalorder %s1434_s10, %s1898_s28 }
 0x3b0   : > { %p1436_p5 = pnand %p1435_p0, %p1691_p1 }
 0x3b1   : > { %p1441_p2 = por %p1440_p12, %p1439_p9 }
 0x3b2   : > { %p1437_p11 = pneg %p1436_p5 }
 0x3b3   : > { %p1443_p6 = por %p1442_p4, %p1441_p2 }
 0x3b5   : > { %p1444_p8 = pnand %p1443_p6, %p1437_p11 }
 0x3b7   : > { %1447 = shalt.err (!%p1444_p8)
}
 0x3b8   : > { %s1504_s15 = smov 128   ;;  %s1505_s13 = smov 8  }
 0x3b9   : > { %1125 = dma.vmem_to_hbm [thread:$0]  (%p1691_p1), %s1900_s16, 2048, %s1898_s28, %s841_s22, %s1504_s15, %s1504_s15, %s1505_s13  }
 0x3ba PF: > { %s869_s30 = sand.u32 1, %s1482_s18   ;;  %p1969_p3 = scmp.ne.s32.totalorder %s1956_s25, 0 }
 0x3bb   : > { %p1970_p7 = scmp.ge.s32.totalorder %s1494_s21, 2  ;;  %s870_s17 = scalar_lea.sflag [#allocation4], %s869_s30 }
 0x3bd   : > { %p1145_p10 = pnand %p1970_p7, %p1969_p3 }
 0x3bf   : > { %1477 = dma.done.wait (!%p1145_p10), %s870_s17, 2048  }
 0x3c0   : > { %1479 = vsyncadd (!%p1145_p10), %s870_s17, 4294965248  ;;  %p20_p13 = scmp.ge.s32.totalorder %s1681_s14, 4   ;;  %s1971_s18 = smov %s1486_s19 }
 0x3c1   : > { %s1972_s19 = smov %s1490_s20  ;;  %s1973_s20 = smov %s1697_s7 }
 0x3c2   : > { %s1974_s21 = smov %s1681_s14  ;;  %22 = sbr.rel (!%p20_p13) target bundleno = 7 (0x7), region = 101 }
 0x3c9   :  { %875 = vsyncpa [#allocation3], 1 }
 0x3ca   :  { %877 = vsyncpa [#allocation3 + $0x1], 1 }
 0x3cb   :  { %878 = vsyncpa [#allocation6], 1 }
 0x3cc   :  { %879 = vsyncpa [#allocation9], 1 }
 0x3cd   :  { %880 = vsyncpa [#allocation4], 1 }
 0x3ce   :  { %882 = vsyncpa [#allocation4 + $0x1], 1 }

</bundles_post_ra>
